<compile_context>
chip_gen: v5e
topology: v5e:2x2
jax: 0.10.0
libtpu: 0.0.40
codegen_flags: <defaults>
</compile_context>

<pallas_src>
import jax
import jax.numpy as jnp
from jax.experimental import pallas as pl
from jax.experimental.pallas import tpu as pltpu

IN_DIM = 4
IN_PAD = 8      # K padded to a sublane multiple for a clean lane-dense x block
HID_DIM = 128
OUT_DIM = 3
OUT_PAD = 8     # output rows padded to one sublane group (was 128 -> 16x fewer bytes)


def _round_up(x, m):
    return ((x + m - 1) // m) * m


def mlp_kernel(xt_ref, w1t_ref, b1t_ref, w2t_ref, b2t_ref, o_ref):
    # xt: (IN_PAD, tile_b)   w1t: (HID, IN_PAD)   b1t: (HID, 1)
    # w2t: (OUT_PAD, HID)    b2t: (OUT_PAD, 1)    o : (OUT_PAD, tile_b)
    # fc1 on the MXU: (128, 8) x (8, tile_b) -> (128, tile_b), f32 accumulate.
    h = jnp.dot(w1t_ref[...], xt_ref[...], preferred_element_type=jnp.float32)
    h = h + b1t_ref[...]                      # lane-broadcast bias (VPU)
    # sigmoid(h) = 0.5 * tanh(0.5*h) + 0.5 : one EUP op per element.
    h = 0.5 * jnp.tanh(0.5 * h) + 0.5
    # fc2 on the MXU: (8, 128) x (128, tile_b) -> (8, tile_b).
    y = jnp.dot(w2t_ref[...], h, preferred_element_type=jnp.float32)
    # Lane-dense, unmasked (OUT_PAD, tile_b) store.
    o_ref[...] = (y + b2t_ref[...]).astype(o_ref.dtype)


def prepare_params(w1, b1, w2, b2):
    """One-time preprocessing: transpose + zero-pad weights to kernel layout."""
    # w1: (IN_DIM, HID), b1: (HID,), w2: (HID, OUT_DIM), b2: (OUT_DIM,)
    w1_t = jnp.pad(w1.T, ((0, 0), (0, IN_PAD - IN_DIM)))         # (HID, IN_PAD)
    b1_t = jnp.reshape(b1, (HID_DIM, 1))                          # (HID, 1)
    w2_t = jnp.pad(w2.T, ((0, OUT_PAD - OUT_DIM), (0, 0)))        # (OUT_PAD, HID)
    b2_t = jnp.pad(jnp.reshape(b2, (OUT_DIM, 1)),
                   ((0, OUT_PAD - OUT_DIM), (0, 0)))              # (OUT_PAD, 1)
    return w1_t, b1_t, w2_t, b2_t


def net_forward(x, w1_t, b1_t, w2_t, b2_t, tile_b=1024):
    B = x.shape[0]
    B8 = _round_up(B, 8)

    # Adaptive tiling: pick the number of tiles first, then size each tile to
    # a lane multiple, so batch-padding overshoot stays small (< 128 rows) and
    # B > tile_b always produces >= 2 grid steps (both TCs busy on v7x).
    n_tiles = pl.cdiv(B8, tile_b)
    if n_tiles == 1:
        tile = B8                                   # block == full array
    else:
        tile = _round_up(pl.cdiv(B8, n_tiles), 128)  # lane-dense tiled blocks
    B_pad = n_tiles * tile

    # x -> feature-major (IN_PAD, B_pad): contiguous lane-dense input stream.
    x_t = jnp.pad(x.T, ((0, IN_PAD - IN_DIM), (0, B_pad - B)))

    cost = pl.CostEstimate(
        flops=2 * B_pad * (IN_PAD * HID_DIM + HID_DIM * OUT_PAD),
        transcendentals=B_pad * HID_DIM,
        bytes_accessed=4 * (IN_PAD * B_pad + HID_DIM * IN_PAD + HID_DIM
                            + OUT_PAD * HID_DIM + OUT_PAD + OUT_PAD * B_pad),
    )

    out_t = pl.pallas_call(
        mlp_kernel,
        out_shape=jax.ShapeDtypeStruct((OUT_PAD, B_pad), jnp.float32),
        grid_spec=pl.GridSpec(
            grid=(n_tiles,),
            in_specs=[
                pl.BlockSpec((IN_PAD, tile), lambda i: (0, i)),     # x_t: batch-tiled
                pl.BlockSpec((HID_DIM, IN_PAD), lambda i: (0, 0)),  # w1_t: resident
                pl.BlockSpec((HID_DIM, 1), lambda i: (0, 0)),       # b1_t: resident
                pl.BlockSpec((OUT_PAD, HID_DIM), lambda i: (0, 0)), # w2_t: resident
                pl.BlockSpec((OUT_PAD, 1), lambda i: (0, 0)),       # b2_t: resident
            ],
            out_specs=pl.BlockSpec((OUT_PAD, tile), lambda i: (0, i)),
        ),
        compiler_params=pltpu.CompilerParams(
            dimension_semantics=("parallel",),   # batch axis -> both TCs on v7x
        ),
        cost_estimate=cost,
    )(x_t, w1_t, b1_t, w2_t, b2_t)

    # Tiny slice + transpose back to (B, 3).
    return out_t[:OUT_DIM, :B].T


def init_params(key):
    # nn.Linear default init: U(-1/sqrt(fan_in), 1/sqrt(fan_in)).
    # Stored in math layout (in_features, out_features); prepare_params
    # converts once to the kernel's transposed/padded layout.
    k1, k2, k3, k4 = jax.random.split(key, 4)
    lim1 = 1.0 / jnp.sqrt(IN_DIM)
    lim2 = 1.0 / jnp.sqrt(HID_DIM)
    w1 = jax.random.uniform(k1, (IN_DIM, HID_DIM), jnp.float32, -lim1, lim1)
    b1 = jax.random.uniform(k2, (HID_DIM,), jnp.float32, -lim1, lim1)
    w2 = jax.random.uniform(k3, (HID_DIM, OUT_DIM), jnp.float32, -lim2, lim2)
    b2 = jax.random.uniform(k4, (OUT_DIM,), jnp.float32, -lim2, lim2)
    return w1, b1, w2, b2


def reference_forward(x, w1, b1, w2, b2):
    h = jax.nn.sigmoid(
        jnp.dot(x, w1, precision=jax.lax.Precision.HIGHEST) + b1)
    return jnp.dot(h, w2, precision=jax.lax.Precision.HIGHEST) + b2


if __name__ == "__main__":
    key = jax.random.PRNGKey(0)
    kx, kp = jax.random.split(key)
    B = 8
    x = jax.random.normal(kx, (B, IN_DIM), jnp.float32)
    w1, b1, w2, b2 = init_params(kp)
    w1_t, b1_t, w2_t, b2_t = prepare_params(w1, b1, w2, b2)

    out = net_forward(x, w1_t, b1_t, w2_t, b2_t)
    out = jax.block_until_ready(out)

    ref = reference_forward(x, w1, b1, w2, b2)
    assert out.shape == (B, OUT_DIM)
    # Tolerance covers default MXU f32 (bf16-pass) rounding and the tanh-based
    # sigmoid vs the highest-precision XLA reference.
    assert jnp.allclose(out, ref, atol=1e-3, rtol=1e-3), \
        f"max abs err {jnp.max(jnp.abs(out - ref))}"
    print("KERNEL_OK")
</pallas_src>

<mosaic_0001>
module attributes {stable_mosaic.version = 11 : i64} {
  func.func @mlp_kernel(%arg0: i32, %arg1: memref<8x8xf32, #tpu.memory_space<vmem>>, %arg2: memref<128x8xf32, #tpu.memory_space<vmem>>, %arg3: memref<128x1xf32, #tpu.memory_space<vmem>>, %arg4: memref<8x128xf32, #tpu.memory_space<vmem>>, %arg5: memref<8x1xf32, #tpu.memory_space<vmem>>, %arg6: memref<8x8xf32, #tpu.memory_space<vmem>>) attributes {dimension_semantics = [#tpu.dimension_semantics<parallel>], iteration_bounds = array<i64: 1>, scalar_prefetch = 0 : i64, scratch_operands = 0 : i64, tpu.core_type = #tpu.core_type<tc>, window_params = [{transform_indices = @transform_0, window_bounds = array<i64: 8, 8>}, {pipeline_mode = #tpu.pipeline_mode<synchronous>, transform_indices = @transform_1, window_bounds = array<i64: 128, 8>}, {pipeline_mode = #tpu.pipeline_mode<synchronous>, transform_indices = @transform_2, window_bounds = array<i64: 128, 1>}, {pipeline_mode = #tpu.pipeline_mode<synchronous>, transform_indices = @transform_3, window_bounds = array<i64: 8, 128>}, {pipeline_mode = #tpu.pipeline_mode<synchronous>, transform_indices = @transform_4, window_bounds = array<i64: 8, 1>}, {transform_indices = @transform_5, window_bounds = array<i64: 8, 8>}]} {
    %c0 = arith.constant 0 : index
    %c0_0 = arith.constant 0 : index
    %0 = vector.load %arg2[%c0, %c0_0] : memref<128x8xf32, #tpu.memory_space<vmem>>, vector<128x8xf32>
    %c0_1 = arith.constant 0 : index
    %c0_2 = arith.constant 0 : index
    %1 = vector.load %arg1[%c0_1, %c0_2] : memref<8x8xf32, #tpu.memory_space<vmem>>, vector<8x8xf32>
    %cst = arith.constant dense<0.000000e+00> : vector<128x8xf32>
    %2 = tpu.matmul %0, %1, %cst {dimension_numbers = #tpu.dot_dimension_numbers<[1], [0], [0], [1], [0, 0, 1, 1], [], []>} : vector<128x8xf32>, vector<8x8xf32>, vector<128x8xf32> -> vector<128x8xf32>
    %c0_3 = arith.constant 0 : index
    %c0_4 = arith.constant 0 : index
    %3 = vector.load %arg3[%c0_3, %c0_4] : memref<128x1xf32, #tpu.memory_space<vmem>>, vector<128x1xf32>
    %4 = vector.broadcast %3 : vector<128x1xf32> to vector<128x8xf32>
    %5 = arith.addf %2, %4 : vector<128x8xf32>
    %cst_5 = arith.constant 5.000000e-01 : f32
    %6 = vector.broadcast %cst_5 : f32 to vector<128x8xf32>
    %7 = arith.mulf %6, %5 : vector<128x8xf32>
    %8 = math.tanh %7 : vector<128x8xf32>
    %cst_6 = arith.constant 5.000000e-01 : f32
    %9 = vector.broadcast %cst_6 : f32 to vector<128x8xf32>
    %10 = arith.mulf %9, %8 : vector<128x8xf32>
    %cst_7 = arith.constant 5.000000e-01 : f32
    %11 = vector.broadcast %cst_7 : f32 to vector<128x8xf32>
    %12 = arith.addf %10, %11 : vector<128x8xf32>
    %c0_8 = arith.constant 0 : index
    %c0_9 = arith.constant 0 : index
    %13 = vector.load %arg4[%c0_8, %c0_9] : memref<8x128xf32, #tpu.memory_space<vmem>>, vector<8x128xf32>
    %cst_10 = arith.constant dense<0.000000e+00> : vector<8x8xf32>
    %14 = tpu.matmul %13, %12, %cst_10 {dimension_numbers = #tpu.dot_dimension_numbers<[1], [0], [0], [1], [0, 0, 1, 1], [], []>} : vector<8x128xf32>, vector<128x8xf32>, vector<8x8xf32> -> vector<8x8xf32>
    %c0_11 = arith.constant 0 : index
    %c0_12 = arith.constant 0 : index
    %15 = vector.load %arg5[%c0_11, %c0_12] : memref<8x1xf32, #tpu.memory_space<vmem>>, vector<8x1xf32>
    %16 = vector.broadcast %15 : vector<8x1xf32> to vector<8x8xf32>
    %17 = arith.addf %14, %16 : vector<8x8xf32>
    %c0_13 = arith.constant 0 : index
    %c0_14 = arith.constant 0 : index
    %18 = vector.load %arg6[%c0_13, %c0_14] : memref<8x8xf32, #tpu.memory_space<vmem>>, vector<8x8xf32>
    tpu.vector_store %arg6[%c0_13, %c0_14], %17 {strides = array<i32>} : memref<8x8xf32, #tpu.memory_space<vmem>>, vector<8x8xf32>,
    return
  }
  func.func @transform_0(%arg0: i32) -> (i32, i32) {
    %c0_i32 = arith.constant 0 : i32
    %c0_i32_0 = arith.constant 0 : i32
    return %c0_i32, %arg0 : i32, i32
  }
  func.func @transform_1(%arg0: i32) -> (i32, i32) {
    %c0_i32 = arith.constant 0 : i32
    %c0_i32_0 = arith.constant 0 : i32
    %c0_i32_1 = arith.constant 0 : i32
    return %c0_i32, %c0_i32_0 : i32, i32
  }
  func.func @transform_2(%arg0: i32) -> (i32, i32) {
    %c0_i32 = arith.constant 0 : i32
    %c0_i32_0 = arith.constant 0 : i32
    %c0_i32_1 = arith.constant 0 : i32
    return %c0_i32, %c0_i32_0 : i32, i32
  }
  func.func @transform_3(%arg0: i32) -> (i32, i32) {
    %c0_i32 = arith.constant 0 : i32
    %c0_i32_0 = arith.constant 0 : i32
    %c0_i32_1 = arith.constant 0 : i32
    return %c0_i32, %c0_i32_0 : i32, i32
  }
  func.func @transform_4(%arg0: i32) -> (i32, i32) {
    %c0_i32 = arith.constant 0 : i32
    %c0_i32_0 = arith.constant 0 : i32
    %c0_i32_1 = arith.constant 0 : i32
    return %c0_i32, %c0_i32_0 : i32, i32
  }
  func.func @transform_5(%arg0: i32) -> (i32, i32) {
    %c0_i32 = arith.constant 0 : i32
    %c0_i32_0 = arith.constant 0 : i32
    return %c0_i32, %arg0 : i32, i32
  }
}

</mosaic_0001>

<bundles_post_ra>
// kernel: tpu_custom_call.1
= control target key start
LH: loop header
LB: loop body
LE: loop exit
PB: predicated region body
PF: predicated region fallthrough
CT: control target
= control target key end

     0   :  { %vm134_vm0 = vcmask 64512   ;;  %v437_v3 = vmov 0   ;;  %s603_s0 = inlined_call_operand.vmem [shape: f32[8,8], index: 0, kind: input, shape index: {}]   ;;  %s604_s1 = inlined_call_operand.vmem [shape: f32[128,8], index: 1, kind: input, shape index: {}]   ;;  %s605_s2 = inlined_call_operand.vmem [shape: f32[128,1], index: 2, kind: input, shape index: {}]   ;;  %s606_s3 = inlined_call_operand.vmem [shape: f32[8,128], index: 3, kind: input, shape index: {}]   ;;  %s607_s4 = inlined_call_operand.vmem [shape: f32[8,1], index: 4, kind: input, shape index: {}]   ;;  %s608_s5 = inlined_call_operand.hbm [shape: f32[8,8], index: 5, kind: output, shape index: {}]  }
   0x1   :  { %v37_v0 = vld [vmem:[%s603_s0] sm:$0xff]  ;;  %v53_v1 = vld [vmem:[%s605_s2 + $0x78] sm:$0xff]  ;;  %376 = vset.pattern.permute.xlu0 %v437_v3  ;;  %v27_v4 = vld [vmem:[%s604_s1 + $0x30] sm:$0xff]  ;;  %377 = vset.pattern.permute.xlu1 %v437_v3 }
   0x2   :  { %v21_v2 = vld [vmem:[%s604_s1] sm:$0xff]  ;;  %198 = vmatpush.msra.mxu0 %v37_v0  ;;  %372 = vmatpush.msra.mxu2 %v37_v0  ;;  %v51_v6 = vld [vmem:[%s605_s2 + $0x68] sm:$0xff]  ;;  %v49_v7 = vld [vmem:[%s605_s2 + $0x58] sm:$0xff] }
   0x3   :  { %v33_v5 = vld [vmem:[%s604_s1 + $0x60] sm:$0xff]  ;;  %373 = vmatpush.msra.mxu3 %v37_v0  ;;  %131 = vperm.xlu0 %376, %v53_v1   ;;  %v52_v8 = vld [vmem:[%s605_s2 + $0x70] sm:$0xff]  ;;  %v22_v9 = vld [vmem:[%s604_s1 + $0x8] sm:$0xff] }
   0x4   :  { %356 = vmatmul.msk.f32.vlgmr.msra.gmra.mxu0 %vm134_vm0, %v21_v2  ;;  %362 = vmatmul.msk.f32.vlgmr.msra.gmra.mxu2 %vm134_vm0, %v27_v4  ;;  %v28_v10 = vld [vmem:[%s604_s1 + $0x38] sm:$0xff]  ;;  %v34_v11 = vld [vmem:[%s604_s1 + $0x68] sm:$0xff] }
   0x5   :  { %368 = vmatmul.msk.f32.vlgmr.msra.gmra.mxu3 %vm134_vm0, %v33_v5  ;;  %378 = vset.pattern.permute.xlu2 %v437_v3 }
   0x6   :  { %121 = vperm.xlu1 %377, %v51_v6   ;;  %111 = vperm.xlu2 %378, %v49_v7  }
   0x7   :  { %10 = vsyncpa [#allocation3], 0  ;;  %v50_v12 = vld [vmem:[%s605_s2 + $0x60] sm:$0xff]  ;;  %v48_v13 = vld [vmem:[%s605_s2 + $0x50] sm:$0xff]  ;;  %s347_s11 = sshll.u32 %s608_s5, 4  ;;  %s348_s11 = int_to_ptr.hbm [resolvable:$true] %s347_s11 }
   0x8   :  { %v47_v14 = vld [vmem:[%s605_s2 + $0x48] sm:$0xff]  ;;  %v23_v15 = vld [vmem:[%s604_s1 + $0x10] sm:$0xff]  ;;  %v29_v16 = vld [vmem:[%s604_s1 + $0x40] sm:$0xff] }
   0x9   :  { %v35_v17 = vld [vmem:[%s604_s1 + $0x70] sm:$0xff]  ;;  %v46_v18 = vld [vmem:[%s605_s2 + $0x40] sm:$0xff]  ;;  %v45_v19 = vld [vmem:[%s605_s2 + $0x38] sm:$0xff] }
   0xa   :  { %v44_v20 = vld [vmem:[%s605_s2 + $0x30] sm:$0xff]  ;;  %v24_v21 = vld [vmem:[%s604_s1 + $0x18] sm:$0xff]  ;;  %v30_v22 = vld [vmem:[%s604_s1 + $0x48] sm:$0xff] }
   0xb   :  { %126 = vperm.xlu0 %376, %v52_v8   ;;  %v36_v23 = vld [vmem:[%s604_s1 + $0x78] sm:$0xff]  ;;  %v43_v24 = vld [vmem:[%s605_s2 + $0x28] sm:$0xff]  ;;  %v42_v25 = vld [vmem:[%s605_s2 + $0x20] sm:$0xff] }
   0xc   :  { %357 = vmatmul.msk.f32.gmra.mxu0 %vm134_vm0, %v22_v9  ;;  %363 = vmatmul.msk.f32.gmra.mxu2 %vm134_vm0, %v28_v10  ;;  %v41_v26 = vld [vmem:[%s605_s2 + $0x18] sm:$0xff]  ;;  %v25_v27 = vld [vmem:[%s604_s1 + $0x20] sm:$0xff]  ;;  %v31_v28 = vld [vmem:[%s604_s1 + $0x50] sm:$0xff] }
   0xd   :  { %369 = vmatmul.msk.f32.gmra.mxu3 %vm134_vm0, %v34_v11  ;;  %v40_v29 = vld [vmem:[%s605_s2 + $0x10] sm:$0xff]  ;;  %v39_v30 = vld [vmem:[%s605_s2 + $0x8] sm:$0xff]  ;;  %v38_v31 = vld [vmem:[%s605_s2] sm:$0xff] }
   0xe   :  { %116 = vperm.xlu1 %377, %v50_v12   ;;  %106 = vperm.xlu2 %378, %v48_v13   ;;  %v26_v32 = vld [vmem:[%s604_s1 + $0x28] sm:$0xff]  ;;  %v32_v33 = vld [vmem:[%s604_s1 + $0x58] sm:$0xff]  ;;  %v313_v34 = vld [vmem:[%s607_s4] sm:$0xff]  ;;  %s438_s4 = smov [#allocation2]  }
   0xf   :  { %s345_s8 = sshll.u32 %s438_s4, 4  ;;  %s346_s8 = int_to_ptr.vmem [resolvable:$true] %s345_s8 }
  0x13   :  { %101 = vperm.xlu0 %376, %v47_v14  }
  0x14   :  { %358 = vmatmul.msk.f32.gmra.mxu0 %vm134_vm0, %v23_v15  ;;  %364 = vmatmul.msk.f32.gmra.mxu2 %vm134_vm0, %v29_v16 }
  0x15   :  { %370 = vmatmul.msk.f32.gmra.mxu3 %vm134_vm0, %v35_v17 }
  0x16   :  { %96 = vperm.xlu1 %377, %v46_v18   ;;  %91 = vperm.xlu2 %378, %v45_v19  }
  0x1b   :  { %86 = vperm.xlu0 %376, %v44_v20  }
  0x1c   :  { %359 = vmatmul.msk.f32.gmra.mxu0 %vm134_vm0, %v24_v21  ;;  %365 = vmatmul.msk.f32.gmra.mxu2 %vm134_vm0, %v30_v22 }
  0x1d   :  { %371 = vmatmul.msk.f32.gmra.mxu3 %vm134_vm0, %v36_v23 }
  0x1e   :  { %81 = vperm.xlu1 %377, %v43_v24   ;;  %76 = vperm.xlu2 %378, %v42_v25  }
  0x23   :  { %71 = vperm.xlu0 %376, %v41_v26  }
  0x24   :  { %360 = vmatmul.msk.f32.gmra.mxu0 %vm134_vm0, %v25_v27  ;;  %366 = vmatmul.msk.f32.gmra.mxu2 %vm134_vm0, %v31_v28 }
  0x26   :  { %66 = vperm.xlu1 %377, %v40_v29   ;;  %61 = vperm.xlu2 %378, %v39_v30  }
  0x2b   :  { %56 = vperm.xlu0 %376, %v38_v31  }
  0x2c   :  { %361 = vmatmul.msk.f32.gmra.mxu0 %vm134_vm0, %v26_v32  ;;  %367 = vmatmul.msk.f32.gmra.mxu2 %vm134_vm0, %v32_v33 }
  0x2e   :  { %316 = vperm.xlu1 %377, %v313_v34  }
  0x60   :  { %v112_v42 = vpop.permute.xlu2 %111 }
  0x68   :  { %v107_v48 = vpop.permute.xlu2 %106 }
  0x70   :  { %v92_v62 = vpop.permute.xlu2 %91 }
  0x75   :  { %v132_v38 = vpop.permute.xlu0 %131 }
  0x78   :  { %v122_v43 = vpop.permute.xlu1 %121  ;;  %v77_v11 = vpop.permute.xlu2 %76 }
  0x7d   :  { %v127_v44 = vpop.permute.xlu0 %126 }
  0x80   :  { %v117_v49 = vpop.permute.xlu1 %116 }
  0x81   :  { %v587_v35 = vpop.f32.mrf.mxu0 }
  0x85   :  { %v102_v51 = vpop.permute.xlu0 %101 }
  0x87   :  { %v218_v36 = vpop.f32.mrf.mxu2 }
  0x88   :  { %v236_v37 = vpop.f32.mrf.mxu3  ;;  %v97_v63 = vpop.permute.xlu1 %96 }
  0x89   :  { %v589_v39 = vpop.f32.mrf.mxu0  ;;  %v237_v54 = vadd.f32 %v236_v37, %v117_v49 }
  0x8b   :  { %v260_v61 = vmul.f32 0.5, %v237_v54 }
  0x8d   :  { %v87_v0 = vpop.permute.xlu0 %86 }
  0x8e   :  { %v219_v23 = vadd.f32 %v218_v36, %v87_v0 }
  0x8f   :  { %v221_v40 = vpop.f32.mrf.mxu2 }
  0x90   :  { %v239_v41 = vpop.f32.mrf.mxu3  ;;  %v82_v16 = vpop.permute.xlu1 %81  ;;  %v222_v19 = vadd.f32 %v221_v40, %v92_v62  ;;  %v254_v32 = vmul.f32 0.5, %v219_v23 }
  0x91   :  { %v591_v45 = vpop.f32.mrf.mxu0  ;;  %v240_v52 = vadd.f32 %v239_v41, %v122_v43  ;;  %v62_v41 = vpop.permute.xlu2 %61 }
  0x92   :  { %v255_v29 = vmul.f32 0.5, %v222_v19  ;;  %v312_v19 = vld [vmem:[%s606_s3] sm:$0xff] }
  0x93   :  { %v261_v58 = vmul.f32 0.5, %v240_v52 }
  0x95   :  { %v72_v24 = vpop.permute.xlu0 %71 }
  0x97   :  { %v224_v46 = vpop.f32.mrf.mxu2 }
  0x98   :  { %v242_v47 = vpop.f32.mrf.mxu3  ;;  %v225_v12 = vadd.f32 %v224_v46, %v97_v63  ;;  %v67_v40 = vpop.permute.xlu1 %66 }
  0x99   :  { %v243_v50 = vadd.f32 %v242_v47, %v127_v44  ;;  %v209_v53 = vpop.f32.mrf.mxu0  ;;  %v207_v43 = vadd.f32 %v591_v45, %v67_v40 }
  0x9a   :  { %v256_v26 = vmul.f32 0.5, %v225_v12  ;;  %v210_v36 = vadd.f32 %v209_v53, %v72_v24 }
  0x9b   :  { %v262_v55 = vmul.f32 0.5, %v243_v50 }
  0x9c   :  { %v251_v50 = vmul.f32 0.5, %v210_v36 }
  0x9d   :  { %379 = vtanh.f32 %v262_v55  ;;  %v57_v46 = vpop.permute.xlu0 %56  ;;  %v250_v55 = vmul.f32 0.5, %v207_v43 }
  0x9e   :  { %381 = vtanh.f32 %v261_v58 }
  0x9f   :  { %v227_v56 = vpop.f32.mrf.mxu2 }
  0xa0   :  { %v245_v57 = vpop.f32.mrf.mxu3  ;;  %v228_v7 = vadd.f32 %v227_v56, %v102_v51  ;;  %v204_v51 = vadd.f32 %v589_v39, %v62_v41  ;;  %v201_v56 = vadd.f32 %v587_v35, %v57_v46 }
  0xa1   :  { %v246_v59 = vadd.f32 %v245_v57, %v132_v38  ;;  %v212_v1 = vpop.f32.mrf.mxu0 }
  0xa2   :  { %v257_v17 = vmul.f32 0.5, %v228_v7  ;;  %v213_v33 = vadd.f32 %v212_v1, %v77_v11  ;;  %v248_v39 = vmul.f32 0.5, %v201_v56 }
  0xa3   :  { %v263_v60 = vmul.f32 0.5, %v246_v59  ;;  %v380_v3 = vpop.eup %379  ;;  %v249_v59 = vmul.f32 0.5, %v204_v51 }
  0xa4   :  { %v382_v4 = vpop.eup %381  ;;  %v294_v9 = vmul.f32 0.5, %v380_v3  ;;  %v252_v44 = vmul.f32 0.5, %v213_v33 }
  0xa5   :  { %383 = vtanh.f32 %v263_v60  ;;  %v293_v15 = vmul.f32 0.5, %v382_v4 }
  0xa6   :  { %385 = vtanh.f32 %v260_v61  ;;  %v310_v21 = vadd.f32 0.5, %v294_v9 }
  0xa7   :  { %v230_v2 = vpop.f32.mrf.mxu2  ;;  %v309_v28 = vadd.f32 0.5, %v293_v15 }
  0xa8   :  { %v231_v5 = vadd.f32 %v230_v2, %v107_v48 }
  0xa9   :  { %v215_v25 = vpop.f32.mrf.mxu0 }
  0xaa   :  { %v258_v13 = vmul.f32 0.5, %v231_v5  ;;  %v216_v30 = vadd.f32 %v215_v25, %v82_v16 }
  0xab   :  { %v384_v6 = vpop.eup %383 }
  0xac   :  { %v295_v8 = vmul.f32 0.5, %v384_v6  ;;  %v386_v10 = vpop.eup %385  ;;  %387 = vtanh.f32 %v258_v13  ;;  %v253_v37 = vmul.f32 0.5, %v216_v30 }
  0xad   :  { %v292_v22 = vmul.f32 0.5, %v386_v10  ;;  %389 = vtanh.f32 %v257_v17 }
  0xae   :  { %v311_v14 = vadd.f32 0.5, %v295_v8 }
  0xaf   :  { %v233_v18 = vpop.f32.mrf.mxu2  ;;  %v308_v31 = vadd.f32 0.5, %v292_v22 }
  0xb0   :  { %v234_v20 = vadd.f32 %v233_v18, %v112_v42  ;;  %319 = vmatpush.msra.mxu1 %v311_v14 }
  0xb2   :  { %v259_v27 = vmul.f32 0.5, %v234_v20  ;;  %320 = vmatpush.msra.mxu1 %v310_v21  ;;  %v388_v34 = vpop.eup %387  ;;  %v317_v20 = vpop.permute.xlu1 %316 }
  0xb3   :  { %v390_v38 = vpop.eup %389  ;;  %v290_v48 = vmul.f32 0.5, %v388_v34 }
  0xb4   :  { %391 = vtanh.f32 %v259_v27  ;;  %321 = vmatpush.msra.mxu1 %v309_v28  ;;  %v289_v54 = vmul.f32 0.5, %v390_v38 }
  0xb5   :  { %393 = vtanh.f32 %v256_v26  ;;  %v306_v57 = vadd.f32 0.5, %v290_v48 }
  0xb6   :  { %322 = vmatpush.msra.mxu1 %v308_v31  ;;  %395 = vtanh.f32 %v255_v29  ;;  %v305_v60 = vadd.f32 0.5, %v289_v54 }
  0xb7   :  { %397 = vtanh.f32 %v254_v32 }
  0xb8   :  { %399 = vtanh.f32 %v253_v37 }
  0xb9   :  { %401 = vtanh.f32 %v252_v44 }
  0xba   :  { %v392_v42 = vpop.eup %391  ;;  %403 = vtanh.f32 %v251_v50 }
  0xbb   :  { %v291_v47 = vmul.f32 0.5, %v392_v42  ;;  %v394_v49 = vpop.eup %393  ;;  %405 = vtanh.f32 %v250_v55 }
  0xbc   :  { %v396_v53 = vpop.eup %395  ;;  %v288_v58 = vmul.f32 0.5, %v394_v49  ;;  %407 = vtanh.f32 %v249_v59 }
  0xbd   :  { %v307_v52 = vadd.f32 0.5, %v291_v47  ;;  %v398_v45 = vpop.eup %397  ;;  %v287_v61 = vmul.f32 0.5, %v396_v53  ;;  %409 = vtanh.f32 %v248_v39 }
  0xbe   :  { %v400_v62 = vpop.eup %399  ;;  %v304_v63 = vadd.f32 0.5, %v288_v58  ;;  %v286_v0 = vmul.f32 0.5, %v398_v45 }
  0xbf   :  { %323 = vmatpush.msra.mxu1 %v307_v52  ;;  %v402_v1 = vpop.eup %401  ;;  %v303_v35 = vadd.f32 0.5, %v287_v61  ;;  %v285_v2 = vmul.f32 0.5, %v400_v62 }
  0xc0   :  { %v404_v3 = vpop.eup %403  ;;  %v302_v4 = vadd.f32 0.5, %v286_v0  ;;  %v284_v5 = vmul.f32 0.5, %v402_v1 }
  0xc1   :  { %324 = vmatpush.msra.mxu1 %v306_v57  ;;  %v406_v6 = vpop.eup %405  ;;  %v301_v7 = vadd.f32 0.5, %v285_v2  ;;  %v283_v8 = vmul.f32 0.5, %v404_v3 }
  0xc2   :  { %v408_v9 = vpop.eup %407  ;;  %v300_v10 = vadd.f32 0.5, %v284_v5  ;;  %v282_v11 = vmul.f32 0.5, %v406_v6 }
  0xc3   :  { %325 = vmatpush.msra.mxu1 %v305_v60  ;;  %v410_v12 = vpop.eup %409  ;;  %v299_v13 = vadd.f32 0.5, %v283_v8  ;;  %v281_v14 = vmul.f32 0.5, %v408_v9 }
  0xc4   :  { %v298_v15 = vadd.f32 0.5, %v282_v11  ;;  %v280_v16 = vmul.f32 0.5, %v410_v12 }
  0xc5   :  { %326 = vmatpush.msra.mxu1 %v304_v63  ;;  %v297_v17 = vadd.f32 0.5, %v281_v14 }
  0xc6   :  { %v296_v18 = vadd.f32 0.5, %v280_v16 }
  0xc7   :  { %327 = vmatpush.msra.mxu1 %v303_v35 }
  0xc9   :  { %328 = vmatpush.msra.mxu1 %v302_v4 }
  0xcb   :  { %329 = vmatpush.msra.mxu1 %v301_v7 }
  0xcd   :  { %330 = vmatpush.msra.mxu1 %v300_v10 }
  0xcf   :  { %331 = vmatpush.msra.mxu1 %v299_v13 }
  0xd1   :  { %332 = vmatpush.msra.mxu1 %v298_v15 }
  0xd3   :  { %333 = vmatpush.msra.mxu1 %v297_v17 }
  0xd5   :  { %334 = vmatpush.msra.mxu1 %v296_v18 }
  0xd6   :  { %335 = vmatmul.f32.vlgmr.msra.gmra.mxu1 %v312_v19 }
 0x153   :  { %v336_v21 = vpop.f32.mrf.mxu1 }
 0x154   :  { %v337_v22 = vadd.f32 %v336_v21, %v317_v20 }
 0x156   :  { %339 = vst.msk [vmem:[#allocation2] sm:$0xff] %vm134_vm0, %v337_v22 }
 0x157   :  { %350 = dma.vmem_to_hbm [thread:$0]  %s346_s8, 128, %s348_s11, [#allocation3]  }
 0x158   :  { %435 = dma.done.wait [#allocation3], 128  }
 0x159   :  { %436 = vsyncadd [#allocation3], 4294967168 }
 0x15a   :  { %355 = vsyncpa [#allocation3], 1 }

</bundles_post_ra>
